<compile_context>
chip_gen: v7x
topology: tpu7x:2x2x1
jax: 0.10.0
libtpu: 0.0.40
codegen_flags: <defaults>
</compile_context>

<pallas_src>
import math
from functools import partial
from typing import NamedTuple

import jax
import jax.numpy as jnp
from jax import lax
from jax.experimental import pallas as pl
from jax.experimental.pallas import tpu as pltpu

_INV_SQRT2 = 1.0 / math.sqrt(2.0)
_SQRT_2_OVER_PI = math.sqrt(2.0 / math.pi)


def _round_up(x, m):
    return ((x + m - 1) // m) * m


def _cdiv(a, b):
    return (a + b - 1) // b


# ---------------------------------------------------------------------------
# Hardware-generation config (best effort; conservative fallback).
# ---------------------------------------------------------------------------
def _tpu_config():
    kind = ""
    try:
        kind = (getattr(jax.devices()[0], "device_kind", "") or "").lower()
    except Exception:
        pass
    cap = None
    try:
        cap = int(getattr(pltpu.get_tpu_info(), "vmem_capacity_bytes", 0)) or None
    except Exception:
        cap = None
    if cap is None:
        cap = 64 * 2**20          # conservative: assume v7x-sized (64 MiB/TC) VMEM
    is_v5e = ("v5 lite" in kind) or ("v5e" in kind) or ("v5litepod" in kind)
    big_vmem = cap >= 128 * 2**20
    is_v7x = (not big_vmem) and (not is_v5e)   # 64 MiB/TC is the v7x signature
    return dict(
        vmem_capacity=cap,
        is_v5e=is_v5e,
        is_v7x=is_v7x,
        bk_max=1024 if big_vmem else 512,      # bigger K tiles on 128 MiB chips
        bm_max=512 if big_vmem else 256,       # bigger batch tiles on 128 MiB chips
        weight_buffers=3 if is_v5e else 2,     # deeper weight streaming on v5e
    )


def _weight_spec(block_shape, index_map, buffers):
    """BlockSpec for a streamed weight slab; deeper buffering where requested."""
    if buffers > 2 and hasattr(pl, "Buffered"):
        try:
            return pl.BlockSpec(block_shape, index_map,
                                pipeline_mode=pl.Buffered(buffers))
        except TypeError:
            pass
    return pl.BlockSpec(block_shape, index_map)


# ---------------------------------------------------------------------------
# Kernels
# ---------------------------------------------------------------------------
def _gelu(t, approx):
    if approx:
        # tanh-approx GELU: tanh runs on the EUP slot instead of a long VPU erf poly.
        return 0.5 * t * (1.0 + jnp.tanh(_SQRT_2_OVER_PI * (t + 0.044715 * t * t * t)))
    return 0.5 * t * (1.0 + lax.erf(t * _INV_SQRT2))   # exact (torch.nn.GELU default)


def _dblock_kernel_f32out(x_ref, w1_ref, b1_ref, w2_ref, b2_ref, y_ref, *,
                          approx_gelu):
    """f32 output: accumulate directly into the revisited output block."""
    k = pl.program_id(1)

    @pl.when(k == 0)
    def _init():
        y_ref[...] = jnp.broadcast_to(b2_ref[...], y_ref.shape)

    t = jnp.dot(x_ref[...], w1_ref[...], preferred_element_type=jnp.float32)
    t = _gelu(t + b1_ref[...], approx_gelu)
    y_ref[...] += jnp.dot(t.astype(w2_ref.dtype), w2_ref[...],
                          preferred_element_type=jnp.float32)


def _dblock_kernel_scratch(x_ref, w1_ref, b1_ref, w2_ref, b2_ref, y_ref,
                           acc_ref, *, approx_gelu):
    """Non-f32 output: f32 VMEM accumulator, cast on the last K step."""
    k = pl.program_id(1)

    @pl.when(k == 0)
    def _init():
        acc_ref[...] = jnp.zeros_like(acc_ref)

    t = jnp.dot(x_ref[...], w1_ref[...], preferred_element_type=jnp.float32)
    t = _gelu(t + b1_ref[...], approx_gelu)
    acc_ref[...] += jnp.dot(t.astype(w2_ref.dtype), w2_ref[...],
                            preferred_element_type=jnp.float32)

    @pl.when(k == pl.num_programs(1) - 1)
    def _fin():
        y_ref[...] = (acc_ref[...] + b2_ref[...]).astype(y_ref.dtype)


# ---------------------------------------------------------------------------
# Parameter preparation (done ONCE, not per call)
# ---------------------------------------------------------------------------
class PreparedDBlockParams(NamedTuple):
    w1: jax.Array      # (in_pad, hid_pad), matmul dtype
    b1: jax.Array      # (1, hid_pad), f32
    w2: jax.Array      # (hid_pad, n2_pad) fused [mu | logsigma], matmul dtype
    b2: jax.Array      # (1, n2_pad), f32
    in_size: int
    in_pad: int
    hid_pad: int
    out_size: int
    n2_pad: int
    bk: int


def prepare_params(params, *, matmul_dtype=jnp.bfloat16, bk_max=None):
    """Fuse mu/logsigma, pad to MXU-friendly shapes, and cast weights once."""
    w1, b1, wmu, bmu, wls, bls = params
    in_sz, hid = w1.shape
    out = wmu.shape[1]

    if bk_max is None:
        bk_max = _tpu_config()["bk_max"]

    # Lane-dense x loads / full MXU-K fill.
    in_pad = _round_up(in_sz, 128)

    # Balanced hidden (K) tiling: waste bounded by one 128-column round-up,
    # never round_up(hid, bk).
    hid128 = _round_up(hid, 128)
    k_tiles = _cdiv(hid128, bk_max)
    bk = _round_up(_cdiv(hid128, k_tiles), 128)
    hid_pad = k_tiles * bk

    # Fused, lane-dense second stage. Padded hidden units contribute GELU(0)=0
    # against zero w2 rows; padded output columns are sliced off in the wrapper.
    n2 = 2 * out
    n2_pad = _round_up(n2, 128)
    w2 = jnp.concatenate([wmu, wls], axis=1)
    b2 = jnp.concatenate([bmu, bls], axis=1)

    w1p = jnp.pad(w1, ((0, in_pad - in_sz), (0, hid_pad - hid)))
    b1p = jnp.pad(b1, ((0, 0), (0, hid_pad - hid))).astype(jnp.float32)
    w2p = jnp.pad(w2, ((0, hid_pad - hid), (0, n2_pad - n2)))
    b2p = jnp.pad(b2, ((0, 0), (0, n2_pad - n2))).astype(jnp.float32)

    if matmul_dtype is not None:
        w1p = w1p.astype(matmul_dtype)
        w2p = w2p.astype(matmul_dtype)

    return PreparedDBlockParams(w1p, b1p, w2p, b2p, in_sz, in_pad,
                                hid_pad, out, n2_pad, bk)


# ---------------------------------------------------------------------------
# Forward wrapper
# ---------------------------------------------------------------------------
def new_dblock(x, params, *, bm=None, bk_max=None,
               matmul_dtype=jnp.bfloat16, approx_gelu=False):
    """x: (B, input_size). Returns (mu, logsigma), each (B, output_size).

    `params` is either the raw 6-tuple from init_params() or a
    PreparedDBlockParams (preferred for repeated calls).  matmul_dtype=None
    keeps f32 MXU operands (tighter numerics, slower); the default bf16 path
    keeps f32 accumulation / bias / GELU, with ~1e-3-level relative error.
    """
    if not isinstance(params, PreparedDBlockParams):
        params = prepare_params(params, matmul_dtype=matmul_dtype, bk_max=bk_max)

    cfg = _tpu_config()
    B, in_sz = x.shape
    assert in_sz == params.in_size, (in_sz, params.in_size)
    out_dtype = x.dtype

    w1, b1, w2, b2 = params.w1, params.b1, params.w2, params.b2
    in_pad, hid_pad = params.in_pad, params.hid_pad
    n2_pad, bk, out = params.n2_pad, params.bk, params.out_size
    k_tiles = hid_pad // bk

    # ---- batch (M) tiling: balanced, generation-aware ---------------------
    if bm is None:
        m_tiles = _cdiv(B, cfg["bm_max"])
        if cfg["is_v7x"] and B >= 256 and m_tiles < 2:
            m_tiles = 2          # give the parallel axis to both TensorCores
        bm = _round_up(_cdiv(B, m_tiles), 8)
    else:
        bm = max(8, _round_up(bm, 8))
    m_tiles = _cdiv(B, bm)
    B_pad = m_tiles * bm

    # ---- per-call input prep (cast + pad rows/cols) ------------------------
    xk = x.astype(w1.dtype)
    if (B_pad != B) or (in_pad != in_sz):
        xk = jnp.pad(xk, ((0, B_pad - B), (0, in_pad - in_sz)))

    # ---- VMEM budget estimate with generation-aware headroom ---------------
    wb = cfg["weight_buffers"]
    w_isz = jnp.dtype(w1.dtype).itemsize
    x_isz = jnp.dtype(xk.dtype).itemsize
    o_isz = jnp.dtype(out_dtype).itemsize
    est = (2 * bm * in_pad * x_isz                 # x blocks (double-buffered)
           + wb * in_pad * bk * w_isz              # w1 blocks
           + wb * bk * n2_pad * w_isz              # w2 blocks
           + 2 * 8 * bk * 4 + 2 * 8 * n2_pad * 4   # biases (sublane-padded)
           + 2 * bm * n2_pad * o_isz               # output blocks
           + bm * n2_pad * 4                       # f32 accumulator (worst case)
           + bm * bk * 4)                          # fc1/GELU intermediate
    cap = cfg["vmem_capacity"]
    vmem_limit = int(min(max(2 * est, 32 * 2**20), int(0.85 * cap)))
    vmem_limit = int(min(max(vmem_limit, (5 * est) // 4), cap))

    use_inplace = (out_dtype == jnp.float32)
    kernel = partial(
        _dblock_kernel_f32out if use_inplace else _dblock_kernel_scratch,
        approx_gelu=approx_gelu)
    scratch = [] if use_inplace else [pltpu.VMEM((bm, n2_pad), jnp.float32)]

    # TODO(synk): for very large output_size, add an N-tile grid axis over
    # n2_pad so the (bm, n2_pad) output block is never the VMEM limiter.
    y = pl.pallas_call(
        kernel,
        out_shape=jax.ShapeDtypeStruct((B_pad, n2_pad), out_dtype),
        grid_spec=pltpu.PrefetchScalarGridSpec(
            num_scalar_prefetch=0,
            grid=(m_tiles, k_tiles),
            in_specs=[
                pl.BlockSpec((bm, in_pad), lambda i, k: (i, 0)),        # x
                _weight_spec((in_pad, bk), lambda i, k: (0, k), wb),    # w1
                pl.BlockSpec((1, bk), lambda i, k: (0, k)),             # b1
                _weight_spec((bk, n2_pad), lambda i, k: (k, 0), wb),    # w2 fused
                pl.BlockSpec((1, n2_pad), lambda i, k: (0, 0)),         # b2 fused
            ],
            out_specs=pl.BlockSpec((bm, n2_pad), lambda i, k: (i, 0)),
            scratch_shapes=scratch,
        ),
        compiler_params=pltpu.CompilerParams(
            dimension_semantics=("parallel", "arbitrary"),
            vmem_limit_bytes=vmem_limit),
    )(xk, w1, b1, w2, b2)

    mu = y[:B, :out]
    logsigma = y[:B, out:2 * out]
    return mu, logsigma


# ---------------------------------------------------------------------------
# Init / reference
# ---------------------------------------------------------------------------
def init_params(key, input_size, hidden_size, output_size):
    """Deterministic init mimicking nn.Linear's uniform(-1/sqrt(fan_in), ...)."""
    ks = jax.random.split(key, 6)

    def lin(kw, kb, fan_in, fan_out):
        bound = 1.0 / math.sqrt(fan_in)
        w = jax.random.uniform(kw, (fan_in, fan_out), jnp.float32, -bound, bound)
        b = jax.random.uniform(kb, (1, fan_out), jnp.float32, -bound, bound)
        return w, b

    w1, b1 = lin(ks[0], ks[1], input_size, hidden_size)
    wmu, bmu = lin(ks[2], ks[3], hidden_size, output_size)
    wls, bls = lin(ks[4], ks[5], hidden_size, output_size)
    return (w1, b1, wmu, bmu, wls, bls)


def _ref_forward(x, params):
    """Pure-JAX reference (exact erf GELU, like torch.nn.GELU)."""
    w1, b1, wmu, bmu, wls, bls = params
    t = x @ w1 + b1
    t = 0.5 * t * (1.0 + lax.erf(t * _INV_SQRT2))
    return t @ wmu + bmu, t @ wls + bls


if __name__ == "__main__":
    key = jax.random.PRNGKey(0)
    k_x, k_p, k_x2, k_p2 = jax.random.split(key, 4)

    # ---- Case 1: small shapes consistent with the module -------------------
    batch, input_size, hidden_size, output_size = 8, 32, 32, 16
    x = jax.random.normal(k_x, (batch, input_size), jnp.float32)
    params = init_params(k_p, input_size, hidden_size, output_size)
    mu_ref, ls_ref = _ref_forward(x, params)

    # Default fast path: bf16 MXU operands, pre-fused/padded weights.
    prep = prepare_params(params)                       # fuse/pad/cast once
    mu, logsigma = new_dblock(x, prep)
    jax.block_until_ready((mu, logsigma))
    assert mu.shape == (batch, output_size) and logsigma.shape == (batch, output_size)
    assert jnp.allclose(mu, mu_ref, atol=2e-2, rtol=2e-2)
    assert jnp.allclose(logsigma, ls_ref, atol=2e-2, rtol=2e-2)

    # f32-operand path (close to the PyTorch f32 forward).
    mu32, ls32 = new_dblock(x, params, matmul_dtype=None)
    jax.block_until_ready((mu32, ls32))
    assert jnp.allclose(mu32, mu_ref, atol=1e-4, rtol=1e-4)
    assert jnp.allclose(ls32, ls_ref, atol=1e-4, rtol=1e-4)

    # ---- Case 2: awkward sizes exercising K-tiling + row/col/N padding -----
    b2_, in2, hid2, out2 = 20, 48, 256, 10
    x2 = jax.random.normal(k_x2, (b2_, in2), jnp.float32)
    params2 = init_params(k_p2, in2, hid2, out2)
    mu2_ref, ls2_ref = _ref_forward(x2, params2)
    mu2, ls2 = new_dblock(x2, params2, matmul_dtype=None, bk_max=128)  # 2 K-tiles
    jax.block_until_ready((mu2, ls2))
    assert mu2.shape == (b2_, out2) and ls2.shape == (b2_, out2)
    assert jnp.allclose(mu2, mu2_ref, atol=1e-4, rtol=1e-4)
    assert jnp.allclose(ls2, ls2_ref, atol=1e-4, rtol=1e-4)

    print("KERNEL_OK")
</pallas_src>

<mosaic_0001>
module attributes {stable_mosaic.version = 11 : i64} {
  func.func @_dblock_kernel_f32out(%arg0: i32, %arg1: i32, %arg2: memref<8x128xbf16, #tpu.memory_space<vmem>>, %arg3: memref<128x128xbf16, #tpu.memory_space<vmem>>, %arg4: memref<1x128xf32, #tpu.memory_space<vmem>>, %arg5: memref<128x128xbf16, #tpu.memory_space<vmem>>, %arg6: memref<1x128xf32, #tpu.memory_space<vmem>>, %arg7: memref<8x128xf32, #tpu.memory_space<vmem>>) attributes {dimension_semantics = [#tpu.dimension_semantics<parallel>, #tpu.dimension_semantics<arbitrary>], iteration_bounds = array<i64: 1, 1>, scalar_prefetch = 0 : i64, scratch_operands = 0 : i64, tpu.core_type = #tpu.core_type<tc>, window_params = [{transform_indices = @transform_0, window_bounds = array<i64: 8, 128>}, {transform_indices = @transform_1, window_bounds = array<i64: 128, 128>}, {transform_indices = @transform_2, window_bounds = array<i64: 1, 128>}, {transform_indices = @transform_3, window_bounds = array<i64: 128, 128>}, {pipeline_mode = #tpu.pipeline_mode<synchronous>, transform_indices = @transform_4, window_bounds = array<i64: 1, 128>}, {transform_indices = @transform_5, window_bounds = array<i64: 8, 128>}]} {
    %c0_i32 = arith.constant 0 : i32
    %0 = arith.cmpi eq, %arg1, %c0_i32 : i32
    %1 = arith.extui %0 : i1 to i32
    %c0_i32_0 = arith.constant 0 : i32
    %2 = arith.cmpi ne, %1, %c0_i32_0 : i32
    scf.if %2 {
      %c0_16 = arith.constant 0 : index
      %c0_17 = arith.constant 0 : index
      %23 = vector.load %arg6[%c0_16, %c0_17] : memref<1x128xf32, #tpu.memory_space<vmem>>, vector<1x128xf32>
      %24 = vector.shape_cast %23 : vector<1x128xf32> to vector<1x128xf32>
      %25 = vector.broadcast %24 : vector<1x128xf32> to vector<8x128xf32>
      %c0_18 = arith.constant 0 : index
      %c0_19 = arith.constant 0 : index
      %26 = vector.load %arg7[%c0_18, %c0_19] : memref<8x128xf32, #tpu.memory_space<vmem>>, vector<8x128xf32>
      tpu.vector_store %arg7[%c0_18, %c0_19], %25 {strides = array<i32>} : memref<8x128xf32, #tpu.memory_space<vmem>>, vector<8x128xf32>,
    } else {
    }
    %c0 = arith.constant 0 : index
    %c0_1 = arith.constant 0 : index
    %3 = vector.load %arg2[%c0, %c0_1] : memref<8x128xbf16, #tpu.memory_space<vmem>>, vector<8x128xbf16>
    %c0_2 = arith.constant 0 : index
    %c0_3 = arith.constant 0 : index
    %4 = vector.load %arg3[%c0_2, %c0_3] : memref<128x128xbf16, #tpu.memory_space<vmem>>, vector<128x128xbf16>
    %cst = arith.constant dense<0.000000e+00> : vector<8x128xf32>
    %5 = tpu.matmul %3, %4, %cst {dimension_numbers = #tpu.dot_dimension_numbers<[1], [0], [0], [1], [0, 0, 1, 1], [], []>} : vector<8x128xbf16>, vector<128x128xbf16>, vector<8x128xf32> -> vector<8x128xf32>
    %c0_4 = arith.constant 0 : index
    %c0_5 = arith.constant 0 : index
    %6 = vector.load %arg4[%c0_4, %c0_5] : memref<1x128xf32, #tpu.memory_space<vmem>>, vector<1x128xf32>
    %7 = vector.broadcast %6 : vector<1x128xf32> to vector<8x128xf32>
    %8 = arith.addf %5, %7 : vector<8x128xf32>
    %cst_6 = arith.constant 5.000000e-01 : f32
    %9 = vector.broadcast %cst_6 : f32 to vector<8x128xf32>
    %10 = arith.mulf %9, %8 : vector<8x128xf32>
    %cst_7 = arith.constant 0.707106769 : f32
    %11 = vector.broadcast %cst_7 : f32 to vector<8x128xf32>
    %12 = arith.mulf %8, %11 : vector<8x128xf32>
    %13 = math.erf %12 : vector<8x128xf32>
    %cst_8 = arith.constant 1.000000e+00 : f32
    %14 = vector.broadcast %cst_8 : f32 to vector<8x128xf32>
    %15 = arith.addf %14, %13 : vector<8x128xf32>
    %16 = arith.mulf %10, %15 : vector<8x128xf32>
    %c0_9 = arith.constant 0 : index
    %c0_10 = arith.constant 0 : index
    %17 = vector.load %arg7[%c0_9, %c0_10] : memref<8x128xf32, #tpu.memory_space<vmem>>, vector<8x128xf32>
    %18 = arith.truncf %16 : vector<8x128xf32> to vector<8x128xbf16>
    %c0_11 = arith.constant 0 : index
    %c0_12 = arith.constant 0 : index
    %19 = vector.load %arg5[%c0_11, %c0_12] : memref<128x128xbf16, #tpu.memory_space<vmem>>, vector<128x128xbf16>
    %cst_13 = arith.constant dense<0.000000e+00> : vector<8x128xf32>
    %20 = tpu.matmul %18, %19, %cst_13 {dimension_numbers = #tpu.dot_dimension_numbers<[1], [0], [0], [1], [0, 0, 1, 1], [], []>} : vector<8x128xbf16>, vector<128x128xbf16>, vector<8x128xf32> -> vector<8x128xf32>
    %21 = arith.addf %17, %20 : vector<8x128xf32>
    %c0_14 = arith.constant 0 : index
    %c0_15 = arith.constant 0 : index
    %22 = vector.load %arg7[%c0_14, %c0_15] : memref<8x128xf32, #tpu.memory_space<vmem>>, vector<8x128xf32>
    tpu.vector_store %arg7[%c0_14, %c0_15], %21 {strides = array<i32>} : memref<8x128xf32, #tpu.memory_space<vmem>>, vector<8x128xf32>,
    return
  }
  func.func @transform_0(%arg0: i32, %arg1: i32) -> (i32, i32) {
    %c0_i32 = arith.constant 0 : i32
    %c0_i32_0 = arith.constant 0 : i32
    return %arg0, %c0_i32 : i32, i32
  }
  func.func @transform_1(%arg0: i32, %arg1: i32) -> (i32, i32) {
    %c0_i32 = arith.constant 0 : i32
    %c0_i32_0 = arith.constant 0 : i32
    return %c0_i32, %arg1 : i32, i32
  }
  func.func @transform_2(%arg0: i32, %arg1: i32) -> (i32, i32) {
    %c0_i32 = arith.constant 0 : i32
    %c0_i32_0 = arith.constant 0 : i32
    return %c0_i32, %arg1 : i32, i32
  }
  func.func @transform_3(%arg0: i32, %arg1: i32) -> (i32, i32) {
    %c0_i32 = arith.constant 0 : i32
    %c0_i32_0 = arith.constant 0 : i32
    return %arg1, %c0_i32 : i32, i32
  }
  func.func @transform_4(%arg0: i32, %arg1: i32) -> (i32, i32) {
    %c0_i32 = arith.constant 0 : i32
    %c0_i32_0 = arith.constant 0 : i32
    %c0_i32_1 = arith.constant 0 : i32
    return %c0_i32, %c0_i32_0 : i32, i32
  }
  func.func @transform_5(%arg0: i32, %arg1: i32) -> (i32, i32) {
    %c0_i32 = arith.constant 0 : i32
    %c0_i32_0 = arith.constant 0 : i32
    return %arg0, %c0_i32 : i32, i32
  }
}

</mosaic_0001>

<bundles_post_ra>
// kernel: tpu_custom_call.1
= control target key start
LH: loop header
LB: loop body
LE: loop exit
PB: predicated region body
PF: predicated region fallthrough
CT: control target
= control target key end

     0   :  { %10 = vsyncpa [#allocation3], 0  ;;  %s608_s0 = inlined_call_operand.hbm [shape: bf16[8,128], index: 0, kind: input, shape index: {}]   ;;  %s609_s1 = inlined_call_operand.hbm [shape: bf16[128,128], index: 1, kind: input, shape index: {}]   ;;  %s610_s2 = inlined_call_operand.vmem [shape: f32[1,128], index: 2, kind: input, shape index: {}]   ;;  %s611_s3 = inlined_call_operand.hbm [shape: bf16[128,128], index: 3, kind: input, shape index: {}]   ;;  %s612_s4 = inlined_call_operand.vmem [shape: f32[1,128], index: 4, kind: input, shape index: {}]   ;;  %s613_s5 = inlined_call_operand.hbm [shape: f32[8,128], index: 5, kind: output, shape index: {}]  }
   0x1   :  { %11 = vsyncpa [#allocation6], 0 }
   0x2   :  { %12 = vsyncpa [#allocation4], 0  ;;  %s510_s18 = smov [#allocation5]   ;;  %s416_s22 = scalar_lea.hbm %s609_s1, 1024 }
   0x3   :  { %s28_s19 = sshll.u32 %s510_s18, 4  ;;  %p417_p0 = scmp.ne.s32.totalorder %s609_s1, %s416_s22  ;;  %s29_s19 = int_to_ptr.vmem [resolvable:$true] %s28_s19 }
   0x4   :  { %p420_p1 = scmp.lt.u32.totalorder %s416_s22, %s609_s1 }
   0x6   :  { %p422_p2 = pnand %p420_p1, %p417_p0 }
   0x8   :  { %425 = shalt.err (!%p422_p2)
}
   0x9   :  { %s426_s27 = scalar_lea.vmem %s29_s19, 1024  ;;  %p431_p4 = scmp.lt.s32.totalorder %s29_s19, %s29_s19 }
   0xa   :  { %p427_p3 = scmp.ne.s32.totalorder %s29_s19, %s426_s27  ;;  %p432_p5 = scmp.lt.s32.totalorder %s426_s27, %s426_s27 }
   0xc   :  { %p433_p6 = por %p432_p5, %p431_p4 }
   0xe   :  { %p434_p7 = pnand %p433_p6, %p427_p3 }
  0x10   :  { %437 = shalt.err (!%p434_p7)
}
  0x11   :  { %s511_s28 = smov 64   ;;  %s512_s29 = smov 4  }
  0x12   :  { %34 = dma.hbm_to_vmem [thread:$0]  %s609_s1, 1024, %s29_s19, [#allocation6], %s511_s28, %s511_s28, %s512_s29  }
  0x13   :  { %s513_s7 = smov [#allocation2]   ;;  %s514_s9 = smov [#allocation7]  }
  0x14   :  { %s19_s8 = sshll.u32 %s513_s7, 4  ;;  %s42_s10 = sshll.u32 %s514_s9, 4  ;;  %s20_s8 = int_to_ptr.vmem [resolvable:$true] %s19_s8  ;;  %s43_s10 = int_to_ptr.vmem [resolvable:$true] %s42_s10 }
  0x15   :  { %s438_s13 = scalar_lea.hbm %s608_s0, 64 }
  0x16   :  { %p439_p8 = scmp.ne.s32.totalorder %s608_s0, %s438_s13  ;;  %p442_p9 = scmp.lt.u32.totalorder %s438_s13, %s608_s0 }
  0x18   :  { %p444_p10 = pnand %p442_p9, %p439_p8 }
  0x1a   :  { %447 = shalt.err (!%p444_p10)
}
  0x1b   :  { %s448_s1 = scalar_lea.vmem %s20_s8, 64  ;;  %p453_p12 = scmp.lt.s32.totalorder %s20_s8, %s20_s8 }
  0x1c   :  { %p449_p11 = scmp.ne.s32.totalorder %s20_s8, %s448_s1  ;;  %p454_p13 = scmp.lt.s32.totalorder %s448_s1, %s448_s1 }
  0x1e   :  { %p455_p0 = por %p454_p13, %p453_p12 }
  0x20   :  { %p456_p1 = pnand %p455_p0, %p449_p11 }
  0x22   :  { %459 = shalt.err (!%p456_p1)
}
  0x23   :  { %22 = dma.hbm_to_vmem [thread:$0]  %s608_s0, 64, %s20_s8, [#allocation3]  }
  0x24   :  { %s460_s22 = scalar_lea.hbm %s611_s3, 1024 }
  0x25   :  { %p461_p2 = scmp.ne.s32.totalorder %s611_s3, %s460_s22  ;;  %p464_p3 = scmp.lt.u32.totalorder %s460_s22, %s611_s3 }
  0x27   :  { %p466_p4 = pnand %p464_p3, %p461_p2 }
  0x29   :  { %469 = shalt.err (!%p466_p4)
}
  0x2a   :  { %s470_s27 = scalar_lea.vmem %s43_s10, 1024  ;;  %p475_p6 = scmp.lt.s32.totalorder %s43_s10, %s43_s10 }
  0x2b   :  { %p471_p5 = scmp.ne.s32.totalorder %s43_s10, %s470_s27  ;;  %p476_p7 = scmp.lt.s32.totalorder %s470_s27, %s470_s27 }
  0x2d   :  { %p477_p8 = por %p476_p7, %p475_p6 }
  0x2f   :  { %p478_p9 = pnand %p477_p8, %p471_p5 }
  0x31   :  { %481 = shalt.err (!%p478_p9)
}
  0x32   :  { %48 = dma.hbm_to_vmem [thread:$0]  %s611_s3, 1024, %s43_s10, [#allocation6], %s511_s28, %s511_s28, %s512_s29  }
  0x33   :  { %504 = dma.done.wait [#allocation3], 64  }
  0x34   :  { %505 = vsyncadd [#allocation3], 4294967232 }
  0x35   :  { %506 = dma.done.wait [#allocation6], 2048  }
  0x36   :  { %507 = vsyncadd [#allocation6], 4294965248  ;;  %v515_v0 = vmov 0.0   ;;  %vm516_vm0 = vmmov 0   ;;  %v398_v1 = vld [vmem:[#allocation5] sm:$0xff]   ;;  %v399_v2 = vld [vmem:[#allocation5 + $0x8] sm:$0xff]  }
  0x37   :  { %350 = vmatprep.subr.bf16.mxu0 %v515_v0  ;;  %366 = vmatprep.mubr.msk.bf16.mxu0 %vm516_vm0, %v515_v0  ;;  %v400_v3 = vld [vmem:[#allocation5 + $0x10] sm:$0xff]   ;;  %v406_v4 = vld [vmem:[#allocation7] sm:$0xff]   ;;  %v401_v5 = vld [vmem:[#allocation5 + $0x18] sm:$0xff]   ;;  %s517_s7 = smov [#allocation8]  }
  0x38   :  { %370 = vmatprep.subr.bf16.mxu1 %v515_v0  ;;  %386 = vmatprep.mubr.msk.bf16.mxu1 %vm516_vm0, %v515_v0  ;;  %v407_v6 = vld [vmem:[#allocation7 + $0x8] sm:$0xff]   ;;  %v402_v7 = vld [vmem:[#allocation5 + $0x20] sm:$0xff]   ;;  %v408_v8 = vld [vmem:[#allocation7 + $0x10] sm:$0xff]   ;;  %s304_s8 = sshll.u32 %s517_s7, 4  ;;  %s305_s8 = int_to_ptr.vmem [resolvable:$true] %s304_s8 }
  0x39   :  { %351 = vmatpush3.bf16.msra.mxu0 %v398_v1  ;;  %371 = vmatpush3.bf16.msra.mxu1 %v406_v4  ;;  %v403_v9 = vld [vmem:[#allocation5 + $0x28] sm:$0xff]   ;;  %v404_v10 = vld [vmem:[#allocation5 + $0x30] sm:$0xff]   ;;  %v405_v11 = vld [vmem:[#allocation5 + $0x38] sm:$0xff]   ;;  %p487_p11 = scmp.lt.s32.totalorder %s305_s8, %s305_s8 }
  0x3a   :  { %352 = vmatprep.subr.bf16.mxu0 %v515_v0  ;;  %372 = vmatprep.subr.bf16.mxu1 %v515_v0  ;;  %v73_v12 = vld [vmem:[#allocation2] sm:$0xf]  ;;  %v410_v14 = vld [vmem:[#allocation7 + $0x20] sm:$0xff]   ;;  %v411_v15 = vld [vmem:[#allocation7 + $0x28] sm:$0xff]  }
  0x3b   :  { %v409_v13 = vld [vmem:[#allocation7 + $0x18] sm:$0xff]   ;;  %v412_v16 = vld [vmem:[#allocation7 + $0x30] sm:$0xff]  }
  0x3c   :  { %v413_v17 = vld [vmem:[#allocation7 + $0x38] sm:$0xff]  }
  0x3d   :  { %353 = vmatpush3.bf16.msra.mxu0 %v399_v2  ;;  %373 = vmatpush3.bf16.msra.mxu1 %v407_v6  ;;  %v315_v18 = vld [vmem:[%s610_s2] ss:$0 sm:$0xff]  ;;  %s482_s2 = scalar_lea.vmem %s305_s8, 128 }
  0x3e   :  { %354 = vmatprep.subr.bf16.mxu0 %v515_v0  ;;  %374 = vmatprep.subr.bf16.mxu1 %v515_v0  ;;  %v314_v30 = vld [vmem:[%s612_s4] ss:$0 sm:$0xff]  ;;  %p483_p10 = scmp.ne.s32.totalorder %s305_s8, %s482_s2  ;;  %p488_p12 = scmp.lt.s32.totalorder %s482_s2, %s482_s2 }
  0x40   :  { %p489_p13 = por %p488_p12, %p487_p11 }
  0x41   :  { %355 = vmatpush3.bf16.msra.mxu0 %v400_v3  ;;  %375 = vmatpush3.bf16.msra.mxu1 %v408_v8 }
  0x42   :  { %356 = vmatprep.subr.bf16.mxu0 %v515_v0  ;;  %376 = vmatprep.subr.bf16.mxu1 %v515_v0  ;;  %p490_p0 = pnand %p489_p13, %p483_p10 }
  0x45   :  { %357 = vmatpush3.bf16.msra.mxu0 %v401_v5  ;;  %377 = vmatpush3.bf16.msra.mxu1 %v409_v13 }
  0x46   :  { %358 = vmatprep.subr.bf16.mxu0 %v515_v0  ;;  %378 = vmatprep.subr.bf16.mxu1 %v515_v0 }
  0x49   :  { %359 = vmatpush3.bf16.msra.mxu0 %v402_v7  ;;  %379 = vmatpush3.bf16.msra.mxu1 %v410_v14 }
  0x4a   :  { %360 = vmatprep.subr.bf16.mxu0 %v515_v0  ;;  %380 = vmatprep.subr.bf16.mxu1 %v515_v0 }
  0x4d   :  { %361 = vmatpush3.bf16.msra.mxu0 %v403_v9  ;;  %381 = vmatpush3.bf16.msra.mxu1 %v411_v15 }
  0x4e   :  { %362 = vmatprep.subr.bf16.mxu0 %v515_v0  ;;  %382 = vmatprep.subr.bf16.mxu1 %v515_v0 }
  0x51   :  { %363 = vmatpush3.bf16.msra.mxu0 %v404_v10  ;;  %383 = vmatpush3.bf16.msra.mxu1 %v412_v16 }
  0x52   :  { %364 = vmatprep.subr.bf16.mxu0 %v515_v0  ;;  %384 = vmatprep.subr.bf16.mxu1 %v515_v0 }
  0x55   :  { %365 = vmatpush3.bf16.msra.mxu0 %v405_v11  ;;  %385 = vmatpush3.bf16.msra.mxu1 %v413_v17 }
  0x58   :  { %367 = vmatmul.mubr.bf16.vlgmr.msra.gmra.mrb[0].mxu0 %v73_v12 }
 0x12b   :  { %v179_v19 = vpop.f32.mrb[0].mxu0 }
 0x12c   :  { %v180_v20 = vadd.f32 %v315_v18, %v179_v19  ;;  %v368_v21 = vpop.f32.mrb[1].mxu0 }
 0x12d   :  { %v182_v22 = vpop.f32.mrb[2].mxu0 }
 0x12e   :  { %v186_v23 = vmul.f32 0.70710677, %v180_v20  ;;  %v369_v24 = vpop.f32.mrb[3].mxu0  ;;  %v185_v26 = vmul.f32 0.5, %v180_v20 }
 0x130   :  { %414 = verf.f32 %v186_v23 }
 0x13a   :  { %v415_v25 = vpop.eup %414 }
 0x13b   :  { %v188_v27 = vadd.f32 1.0, %v415_v25 }
 0x13d   :  { %v189_v28 = vmul.f32 %v188_v27, %v185_v26 }
 0x13f   :  { %v191_v29 = vpack.c.bf16 %v189_v28, %v189_v28 }
 0x141   :  { %387 = vmatmul.mubr.bf16.vlgmr.msra.gmra.mrb[0].mxu1 %v191_v29 }
 0x214   :  { %v290_v31 = vpop.f32.mrb[0].mxu1 }
 0x215   :  { %v296_v32 = vadd.f32 %v314_v30, %v290_v31  ;;  %v388_v33 = vpop.f32.mrb[1].mxu1 }
 0x216   :  { %v293_v34 = vpop.f32.mrb[2].mxu1 }
 0x217   :  { %297 = vst [vmem:[#allocation8] sm:$0xff] %v296_v32  ;;  %v389_v35 = vpop.f32.mrb[3].mxu1 }
 0x218   :  { %493 = shalt.err (!%p490_p0)
}
 0x219   :  { %s494_s4 = scalar_lea.hbm %s613_s5, 128 }
 0x21a   :  { %p495_p1 = scmp.ne.s32.totalorder %s613_s5, %s494_s4  ;;  %p498_p2 = scmp.lt.u32.totalorder %s494_s4, %s613_s5 }
 0x21c   :  { %p500_p3 = pnand %p498_p2, %p495_p1 }
 0x21e   :  { %503 = shalt.err (!%p500_p3)
}
 0x21f   :  { %307 = dma.vmem_to_hbm [thread:$0]  %s305_s8, 128, %s613_s5, [#allocation4]  }
 0x220   :  { %508 = dma.done.wait [#allocation4], 128  }
 0x221   :  { %509 = vsyncadd [#allocation4], 4294967168 }
 0x222   :  { %311 = vsyncpa [#allocation3], 1 }
 0x223   :  { %312 = vsyncpa [#allocation6], 1 }
 0x224   :  { %313 = vsyncpa [#allocation4], 1 }

</bundles_post_ra>
